<compile_context>
chip_gen: v7x
topology: tpu7x:2x2x1
jax: 0.10.0
libtpu: 0.0.40
codegen_flags: <defaults>
</compile_context>

<pallas_src>
import functools

import jax
import jax.numpy as jnp
from jax import lax
from jax.experimental import pallas as pl
from jax.experimental.pallas import tpu as pltpu

EPS = 1e-5
LANE = 128
SUBLANE_BF16 = 16


def _round_up(n, m):
    return ((n + m - 1) // m) * m


def _projection_head_kernel(x_ref, w1_ref, gb_ref, w2_ref, o_ref, *, b_true):
    """One (split, H-tile) grid step.

    x_ref : [B_pad, IN_pad]     bf16  (resident across the whole grid)
    w1_ref: [1, IN_pad, TH]     bf16  contiguous pre-tiled W1^T tile
    gb_ref: [2, TH]             f32   row 0 = gamma, row 1 = beta
    w2_ref: [TH, OUT_pad]       bf16  contiguous H-slab of W2^T
    o_ref : [1, B_pad, OUT_pad] f32   per-split partial output (accumulator)
    """
    hi = pl.program_id(1)

    @pl.when(hi == 0)
    def _():
        o_ref[...] = jnp.zeros_like(o_ref)

    # ---- block 1: Linear (bf16 operands, f32 accumulation on the MXU).
    # The Linear bias is dropped: training-mode BatchNorm cancels it exactly.
    h = jnp.dot(x_ref[0] if x_ref.shape == () else x_ref[...], w1_ref[0],
                preferred_element_type=jnp.float32)

    # ---- BatchNorm1d: training-mode batch statistics (biased variance).
    # Zero-padded batch rows contribute 0 to both sums (no bias was added),
    # so no row masking is needed; divide by the true batch size.
    inv_n = 1.0 / float(b_true)
    mean = jnp.sum(h, axis=0, keepdims=True) * inv_n
    var = jnp.maximum(
        jnp.sum(h * h, axis=0, keepdims=True) * inv_n - mean * mean, 0.0)

    gb = gb_ref[...]
    scale = gb[0:1, :] * lax.rsqrt(var + EPS)        # gamma * rsqrt(var+eps) (EUP)
    bias = gb[1:2, :] - mean * scale                 # beta - mean*scale
    h_act = jnp.maximum(h * scale + bias, 0.0)       # folded BN FMA + ReLU

    # ---- block 2: Linear; the H grid axis is the K reduction.  o_ref's block
    # index is constant along it, so it stays resident in VMEM.
    o_ref[0] = o_ref[0] + jnp.dot(
        h_act.astype(jnp.bfloat16), w2_ref[...],
        preferred_element_type=jnp.float32)


def prepare_params(w1, b1, gamma, beta, w2, b2, *, block_h=256, num_splits=2):
    """Pad / pre-tile / bf16-cast the weights ONCE (outside the hot path).

    PyTorch Linear convention: w1 is [hidden, in], w2 is [out, hidden].
    num_splits: size of the leading "parallel" grid axis (2 feeds both v7x
    TensorCores; it is a harmless serial split on single-TC v5e/v6e).
    b1 is intentionally unused (training-mode BatchNorm cancels it exactly).
    """
    del b1  # cancelled by training-mode BatchNorm
    assert block_h % LANE == 0, "block_h must be a multiple of 128"
    hid, in_dim = w1.shape
    out_dim = w2.shape[0]

    in_p = _round_up(in_dim, LANE)
    h_p = _round_up(hid, block_h * num_splits)
    out_p = _round_up(out_dim, LANE)
    n_h = h_p // block_h

    # W1^T padded to [IN_pad, H_pad], then pre-tiled to [n_h, IN_pad, TH] so
    # every grid step's W1 tile is one contiguous HBM region.
    w1_t = jnp.zeros((in_p, h_p), jnp.bfloat16)
    w1_t = w1_t.at[:in_dim, :hid].set(w1.T.astype(jnp.bfloat16))
    w1_tiled = w1_t.reshape(in_p, n_h, block_h).transpose(1, 0, 2)

    # W2^T padded to [H_pad, OUT_pad]; consecutive-row H-slabs are already
    # contiguous in row-major layout.
    w2_t = jnp.zeros((h_p, out_p), jnp.bfloat16)
    w2_t = w2_t.at[:hid, :out_dim].set(w2.T.astype(jnp.bfloat16))

    # gamma/beta packed into one [2, H_pad] f32 array -> one small DMA per step.
    gb = jnp.zeros((2, h_p), jnp.float32)
    gb = gb.at[0, :hid].set(gamma.astype(jnp.float32))
    gb = gb.at[1, :hid].set(beta.astype(jnp.float32))

    b2_f32 = b2.astype(jnp.float32)  # added in the tiny wrapper epilogue

    dims = dict(in_dim=in_dim, hid=hid, out_dim=out_dim,
                in_p=in_p, h_p=h_p, out_p=out_p,
                block_h=block_h, num_splits=num_splits, n_h=n_h)
    return (w1_tiled, gb, w2_t, b2_f32), dims


def _vmem_cap_bytes():
    """Physical VMEM per TensorCore minus headroom (safe on v5e/v6e/v7x)."""
    try:
        cap = int(pltpu.get_tpu_info().vmem_capacity_bytes)
    except Exception:
        cap = 64 << 20  # conservative fallback = v7x physical per-TC VMEM
    return max(cap - (16 << 20), 8 << 20)


def projection_head_forward(x, params, dims):
    """x: [B, in_dim] float32 -> [B, out_dim] float32."""
    w1_tiled, gb, w2_t, b2 = params
    b = x.shape[0]
    in_dim, out_dim = dims["in_dim"], dims["out_dim"]
    in_p, out_p = dims["in_p"], dims["out_p"]
    th, n_splits, n_h = dims["block_h"], dims["num_splits"], dims["n_h"]
    n_h_per = n_h // n_splits

    # TODO(synk): the pad+cast of x is a separate XLA op (one extra HBM round
    # trip); fuse via allow_input_fusion if it ever shows up in a trace.
    b_pad = _round_up(b, SUBLANE_BF16)
    x_p = jnp.zeros((b_pad, in_p), jnp.bfloat16)
    x_p = x_p.at[:b, :in_dim].set(x.astype(jnp.bfloat16))

    # TODO(synk): b baked in as a Python int recompiles per batch size.
    kernel = functools.partial(_projection_head_kernel, b_true=b)

    cost = pl.CostEstimate(
        flops=2 * b * (in_dim * dims["hid"] + dims["hid"] * out_dim),
        transcendentals=dims["hid"],
        bytes_accessed=int(x_p.size * 2 + w1_tiled.size * 2 + w2_t.size * 2
                           + gb.size * 4 + n_splits * b_pad * out_p * 4),
    )

    # VMEM budget: double-buffered pipelined blocks + slack, capped at the
    # per-core physical capacity minus headroom (valid on v7x's 64 MiB).
    per_buf = (b_pad * in_p * 2          # x block (bf16, resident)
               + in_p * th * 2           # W1 tile (bf16)
               + 2 * th * 4              # gamma/beta tile (f32)
               + th * out_p * 2          # W2 tile (bf16)
               + b_pad * out_p * 4)      # output block (f32)
    vmem_limit = int(min(max(2 * per_buf + (2 << 20), 4 << 20), _vmem_cap_bytes()))

    grid_spec = pltpu.PrefetchScalarGridSpec(
        num_scalar_prefetch=0,
        grid=(n_splits, n_h_per),
        in_specs=[
            # x: stays resident (constant block index).
            pl.BlockSpec((b_pad, in_p), lambda c, hi: (0, 0)),
            # W1^T: contiguous pre-tiled [n_h, IN_pad, TH] tiles.
            pl.BlockSpec((1, in_p, th), lambda c, hi: (c * n_h_per + hi, 0, 0)),
            # gamma/beta packed [2, H_pad].
            pl.BlockSpec((2, th), lambda c, hi: (0, c * n_h_per + hi)),
            # W2^T H-slab.
            pl.BlockSpec((th, out_p), lambda c, hi: (c * n_h_per + hi, 0)),
        ],
        out_specs=pl.BlockSpec((1, b_pad, out_p), lambda c, hi: (c, 0, 0)),
    )

    partial_out = pl.pallas_call(
        kernel,
        out_shape=jax.ShapeDtypeStruct((n_splits, b_pad, out_p), jnp.float32),
        grid_spec=grid_spec,
        compiler_params=pltpu.CompilerParams(
            dimension_semantics=("parallel", "arbitrary"),
            vmem_limit_bytes=vmem_limit,
        ),
        cost_estimate=cost,
    )(x_p, w1_tiled, gb, w2_t)

    # Tiny epilogue: sum per-split partials, add the final Linear bias, unpad.
    return partial_out.sum(axis=0)[:b, :out_dim] + b2[None, :]


# ----------------------------- references ----------------------------------

def reference_f32(x, w1, b1, gamma, beta, w2, b2):
    """Full-f32 semantics of the PyTorch module (training-mode BatchNorm)."""
    h = x @ w1.T + b1
    mean = jnp.mean(h, axis=0, keepdims=True)
    var = jnp.mean((h - mean) ** 2, axis=0, keepdims=True)
    h = (h - mean) * lax.rsqrt(var + EPS) * gamma + beta
    h = jnp.maximum(h, 0.0)
    return h @ w2.T + b2


def reference_bf16(x, w1, b1, gamma, beta, w2, b2):
    """Same mixed-precision path as the kernel (bf16 matmul operands, f32 acc)."""
    h = jnp.dot(x.astype(jnp.bfloat16), w1.T.astype(jnp.bfloat16),
                preferred_element_type=jnp.float32) + b1
    mean = jnp.mean(h, axis=0, keepdims=True)
    var = jnp.mean((h - mean) ** 2, axis=0, keepdims=True)
    scale = gamma * lax.rsqrt(var + EPS)
    h = jnp.maximum(h * scale + (beta - mean * scale), 0.0)
    return jnp.dot(h.astype(jnp.bfloat16), w2.T.astype(jnp.bfloat16),
                   preferred_element_type=jnp.float32) + b2


if __name__ == "__main__":
    # Small, deliberately unaligned B/IN/OUT: exercises batch/lane padding and
    # a 2-split grid (HID=512, block_h=256, num_splits=2 -> one tile per split).
    B, IN, HID, OUT = 12, 200, 512, 96

    key = jax.random.PRNGKey(0)
    kx, kw1, kb1, kg, kbt, kw2, kb2 = jax.random.split(key, 7)

    x = jax.random.normal(kx, (B, IN), dtype=jnp.float32)

    bound1 = 1.0 / float(IN) ** 0.5
    w1 = jax.random.uniform(kw1, (HID, IN), minval=-bound1, maxval=bound1, dtype=jnp.float32)
    b1 = jax.random.uniform(kb1, (HID,), minval=-bound1, maxval=bound1, dtype=jnp.float32)

    # Arbitrary (as-if-learned) BatchNorm affine parameters for a stronger check.
    gamma = 1.0 + 0.1 * jax.random.normal(kg, (HID,), dtype=jnp.float32)
    beta = 0.1 * jax.random.normal(kbt, (HID,), dtype=jnp.float32)

    bound2 = 1.0 / float(HID) ** 0.5
    w2 = jax.random.uniform(kw2, (OUT, HID), minval=-bound2, maxval=bound2, dtype=jnp.float32)
    b2 = jax.random.uniform(kb2, (OUT,), minval=-bound2, maxval=bound2, dtype=jnp.float32)

    params, dims = prepare_params(w1, b1, gamma, beta, w2, b2,
                                  block_h=256, num_splits=2)
    out = projection_head_forward(x, params, dims)
    out = jax.block_until_ready(out)
    assert out.shape == (B, OUT)

    ref_mp = reference_bf16(x, w1, b1, gamma, beta, w2, b2)  # same numerics path
    ref_fp = reference_f32(x, w1, b1, gamma, beta, w2, b2)   # true f32 module semantics
    assert jnp.allclose(out, ref_mp, atol=5e-3, rtol=5e-3), "mismatch vs bf16-path reference"
    assert jnp.allclose(out, ref_fp, atol=5e-2, rtol=5e-2), "mismatch vs f32 reference"

    print("KERNEL_OK")
</pallas_src>

<mosaic_0001>
module attributes {stable_mosaic.version = 11 : i64} {
  func.func @_projection_head_kernel(%arg0: i32, %arg1: i32, %arg2: memref<16x256xbf16, #tpu.memory_space<vmem>>, %arg3: memref<1x256x256xbf16, #tpu.memory_space<vmem>>, %arg4: memref<2x256xf32, #tpu.memory_space<vmem>>, %arg5: memref<256x128xbf16, #tpu.memory_space<vmem>>, %arg6: memref<1x16x128xf32, #tpu.memory_space<vmem>>) attributes {dimension_semantics = [#tpu.dimension_semantics<parallel>, #tpu.dimension_semantics<arbitrary>], iteration_bounds = array<i64: 2, 1>, scalar_prefetch = 0 : i64, scratch_operands = 0 : i64, tpu.core_type = #tpu.core_type<tc>, window_params = [{pipeline_mode = #tpu.pipeline_mode<synchronous>, transform_indices = @transform_0, window_bounds = array<i64: 16, 256>}, {transform_indices = @transform_1, window_bounds = array<i64: 1, 256, 256>}, {transform_indices = @transform_2, window_bounds = array<i64: 2, 256>}, {transform_indices = @transform_3, window_bounds = array<i64: 256, 128>}, {transform_indices = @transform_4, window_bounds = array<i64: 1, 16, 128>}]} {
    %c0_i32 = arith.constant 0 : i32
    %0 = arith.cmpi eq, %arg1, %c0_i32 : i32
    %1 = arith.extui %0 : i1 to i32
    %c0_i32_0 = arith.constant 0 : i32
    %2 = arith.cmpi ne, %1, %c0_i32_0 : i32
    scf.if %2 {
      %cst_23 = arith.constant 0.000000e+00 : f32
      %44 = vector.broadcast %cst_23 : f32 to vector<1x16x128xf32>
      %c0_24 = arith.constant 0 : index
      %c0_25 = arith.constant 0 : index
      %c0_26 = arith.constant 0 : index
      %45 = vector.load %arg6[%c0_24, %c0_25, %c0_26] : memref<1x16x128xf32, #tpu.memory_space<vmem>>, vector<1x16x128xf32>
      tpu.vector_store %arg6[%c0_24, %c0_25, %c0_26], %44 {strides = array<i32>} : memref<1x16x128xf32, #tpu.memory_space<vmem>>, vector<1x16x128xf32>,
    } else {
    }
    %c0 = arith.constant 0 : index
    %c0_1 = arith.constant 0 : index
    %3 = vector.load %arg2[%c0, %c0_1] : memref<16x256xbf16, #tpu.memory_space<vmem>>, vector<16x256xbf16>
    %c0_2 = arith.constant 0 : index
    %c0_3 = arith.constant 0 : index
    %c0_4 = arith.constant 0 : index
    %4 = vector.load %arg3[%c0_2, %c0_3, %c0_4] : memref<1x256x256xbf16, #tpu.memory_space<vmem>>, vector<1x256x256xbf16>
    %5 = vector.shape_cast %4 : vector<1x256x256xbf16> to vector<256x256xbf16>
    %cst = arith.constant dense<0.000000e+00> : vector<16x256xf32>
    %6 = tpu.matmul %3, %5, %cst {dimension_numbers = #tpu.dot_dimension_numbers<[1], [0], [0], [1], [0, 0, 1, 1], [], []>} : vector<16x256xbf16>, vector<256x256xbf16>, vector<16x256xf32> -> vector<16x256xf32>
    %cst_5 = arith.constant dense<0.000000e+00> : vector<256xf32>
    %7 = vector.multi_reduction <add>, %6, %cst_5 [0] : vector<16x256xf32> to vector<256xf32>
    %8 = vector.shape_cast %7 : vector<256xf32> to vector<1x256xf32>
    %cst_6 = arith.constant 0.0833333358 : f32
    %9 = vector.broadcast %cst_6 : f32 to vector<1x256xf32>
    %10 = arith.mulf %8, %9 : vector<1x256xf32>
    %11 = arith.mulf %6, %6 : vector<16x256xf32>
    %cst_7 = arith.constant dense<0.000000e+00> : vector<256xf32>
    %12 = vector.multi_reduction <add>, %11, %cst_7 [0] : vector<16x256xf32> to vector<256xf32>
    %13 = vector.shape_cast %12 : vector<256xf32> to vector<1x256xf32>
    %cst_8 = arith.constant 0.0833333358 : f32
    %14 = vector.broadcast %cst_8 : f32 to vector<1x256xf32>
    %15 = arith.mulf %13, %14 : vector<1x256xf32>
    %16 = arith.mulf %10, %10 : vector<1x256xf32>
    %17 = arith.subf %15, %16 : vector<1x256xf32>
    %cst_9 = arith.constant 0.000000e+00 : f32
    %18 = vector.broadcast %cst_9 : f32 to vector<1x256xf32>
    %19 = arith.maximumf %17, %18 : vector<1x256xf32>
    %c0_10 = arith.constant 0 : index
    %c0_11 = arith.constant 0 : index
    %20 = vector.load %arg4[%c0_10, %c0_11] : memref<2x256xf32, #tpu.memory_space<vmem>>, vector<2x256xf32>
    %21 = vector.extract_strided_slice %20 {offsets = [0, 0], sizes = [1, 256], strides = [1, 1]} : vector<2x256xf32> to vector<1x256xf32>
    %cst_12 = arith.constant 9.99999974E-6 : f32
    %22 = vector.broadcast %cst_12 : f32 to vector<1x256xf32>
    %23 = arith.addf %19, %22 : vector<1x256xf32>
    %24 = math.rsqrt %23 : vector<1x256xf32>
    %25 = arith.mulf %21, %24 : vector<1x256xf32>
    %26 = vector.extract_strided_slice %20 {offsets = [1, 0], sizes = [1, 256], strides = [1, 1]} : vector<2x256xf32> to vector<1x256xf32>
    %27 = arith.mulf %10, %25 : vector<1x256xf32>
    %28 = arith.subf %26, %27 : vector<1x256xf32>
    %29 = vector.broadcast %25 : vector<1x256xf32> to vector<16x256xf32>
    %30 = arith.mulf %6, %29 : vector<16x256xf32>
    %31 = vector.broadcast %28 : vector<1x256xf32> to vector<16x256xf32>
    %32 = arith.addf %30, %31 : vector<16x256xf32>
    %cst_13 = arith.constant 0.000000e+00 : f32
    %33 = vector.broadcast %cst_13 : f32 to vector<16x256xf32>
    %34 = arith.maximumf %32, %33 : vector<16x256xf32>
    %c0_14 = arith.constant 0 : index
    %c0_15 = arith.constant 0 : index
    %c0_16 = arith.constant 0 : index
    %35 = vector.load %arg6[%c0_14, %c0_15, %c0_16] : memref<1x16x128xf32, #tpu.memory_space<vmem>>, vector<1x16x128xf32>
    %36 = vector.shape_cast %35 : vector<1x16x128xf32> to vector<16x128xf32>
    %37 = arith.truncf %34 : vector<16x256xf32> to vector<16x256xbf16>
    %c0_17 = arith.constant 0 : index
    %c0_18 = arith.constant 0 : index
    %38 = vector.load %arg5[%c0_17, %c0_18] : memref<256x128xbf16, #tpu.memory_space<vmem>>, vector<256x128xbf16>
    %cst_19 = arith.constant dense<0.000000e+00> : vector<16x128xf32>
    %39 = tpu.matmul %37, %38, %cst_19 {dimension_numbers = #tpu.dot_dimension_numbers<[1], [0], [0], [1], [0, 0, 1, 1], [], []>} : vector<16x256xbf16>, vector<256x128xbf16>, vector<16x128xf32> -> vector<16x128xf32>
    %40 = arith.addf %36, %39 : vector<16x128xf32>
    %c0_20 = arith.constant 0 : index
    %c0_21 = arith.constant 0 : index
    %c0_22 = arith.constant 0 : index
    %41 = vector.load %arg6[%c0_20, %c0_21, %c0_22] : memref<1x16x128xf32, #tpu.memory_space<vmem>>, vector<1x16x128xf32>
    %42 = vector.shape_cast %41 : vector<1x16x128xf32> to vector<16x128xf32>
    %43 = vector.shape_cast %40 : vector<16x128xf32> to vector<1x16x128xf32>
    tpu.vector_store %arg6[%c0_20, %c0_21, %c0_22], %43 {strides = array<i32>} : memref<1x16x128xf32, #tpu.memory_space<vmem>>, vector<1x16x128xf32>,
    return
  }
  func.func @transform_0(%arg0: i32, %arg1: i32) -> (i32, i32) {
    %c0_i32 = arith.constant 0 : i32
    %c0_i32_0 = arith.constant 0 : i32
    %c0_i32_1 = arith.constant 0 : i32
    return %c0_i32, %c0_i32_0 : i32, i32
  }
  func.func @transform_1(%arg0: i32, %arg1: i32) -> (i32, i32, i32) {
    %c1_i32 = arith.constant 1 : i32
    %0 = arith.muli %arg0, %c1_i32 : i32
    %1 = arith.addi %0, %arg1 : i32
    %c0_i32 = arith.constant 0 : i32
    %c0_i32_0 = arith.constant 0 : i32
    %c0_i32_1 = arith.constant 0 : i32
    return %1, %c0_i32, %c0_i32_0 : i32, i32, i32
  }
  func.func @transform_2(%arg0: i32, %arg1: i32) -> (i32, i32) {
    %c1_i32 = arith.constant 1 : i32
    %0 = arith.muli %arg0, %c1_i32 : i32
    %1 = arith.addi %0, %arg1 : i32
    %c0_i32 = arith.constant 0 : i32
    %c0_i32_0 = arith.constant 0 : i32
    return %c0_i32, %1 : i32, i32
  }
  func.func @transform_3(%arg0: i32, %arg1: i32) -> (i32, i32) {
    %c1_i32 = arith.constant 1 : i32
    %0 = arith.muli %arg0, %c1_i32 : i32
    %1 = arith.addi %0, %arg1 : i32
    %c0_i32 = arith.constant 0 : i32
    %c0_i32_0 = arith.constant 0 : i32
    return %1, %c0_i32 : i32, i32
  }
  func.func @transform_4(%arg0: i32, %arg1: i32) -> (i32, i32, i32) {
    %c0_i32 = arith.constant 0 : i32
    %c0_i32_0 = arith.constant 0 : i32
    %c0_i32_1 = arith.constant 0 : i32
    return %arg0, %c0_i32, %c0_i32_0 : i32, i32, i32
  }
}

</mosaic_0001>

<bundles_post_ra>
// kernel: tpu_custom_call.1
= control target key start
LH: loop header
LB: loop body
LE: loop exit
PB: predicated region body
PF: predicated region fallthrough
CT: control target
= control target key end

     0   :  { %s1941_s0 = inlined_call_operand.hbm [shape: bf16[16,256], index: 0, kind: input, shape index: {}]   ;;  %s1942_s1 = inlined_call_operand.hbm [shape: bf16[2,256,256], index: 1, kind: input, shape index: {}]   ;;  %s1943_s2 = inlined_call_operand.hbm [shape: f32[2,512], index: 2, kind: input, shape index: {}]   ;;  %s1944_s3 = inlined_call_operand.hbm [shape: bf16[512,128], index: 3, kind: input, shape index: {}]   ;;  %s1945_s4 = inlined_call_operand.hbm [shape: f32[2,16,128], index: 4, kind: output, shape index: {}]  }
   0x1   :  { %1961 = sst [smem:[#allocation19_spill]] %s1942_s1 }
   0x2   :  { %9 = vsyncpa [#allocation3], 0 }
   0x3   :  { %10 = vsyncpa [#allocation6], 0 }
   0x4   :  { %12 = vsyncpa [#allocation6 + $0x1], 0 }
   0x5   :  { %13 = vsyncpa [#allocation9], 0 }
   0x6   :  { %15 = vsyncpa [#allocation9 + $0x1], 0 }
   0x7   :  { %16 = vsyncpa [#allocation4], 0 }
   0x8   :  { %18 = vsyncpa [#allocation4 + $0x1], 0  ;;  %s1550_s15 = smov 0   ;;  %s1552_s16 = smov 0  }
   0x9   :  { %s1554_s17 = smov 0   ;;  %s1556_s18 = smov 0  }
   0xa   :  { %s1558_s19 = smov 0   ;;  %s1560_s20 = smov 0  }
   0xb LB: > { %1962 = sst [smem:[#allocation15_spill]] %s1499_s17  ;;  %s36_s21 = sadd.s32 1, %s1507_s19  ;;  %s1511_s20 = sphi %s1560_s20, %s24_s20   ;;  %s1507_s19 = sphi %s1558_s19, %s1994_s19   ;;  %s1503_s18 = sphi %s1556_s18, %s1993_s18   ;;  %s1499_s17 = sphi %s1554_s17, %s1989_s17   ;;  %s1495_s16 = sphi %s1552_s16, %s1992_s16   ;;  %s1491_s15 = sphi %s1550_s15, %s1991_s15  }
   0xc   : > { %1963 = sst [smem:[#allocation16_spill]] %s1511_s20  ;;  %s66_s22 = sadd.s32 1, %s1499_s17 }
   0xd   : > { %p38_p0 = scmp.ge.s32.totalorder %s36_s21, 2  ;;  %p1946_p1 = scmp.ne.s32.totalorder %s1499_s17, %s1495_s16 }
   0xe   : > { %p74_p2 = scmp.eq.s32.totalorder %s1511_s20, 0  ;;  %p1172_p6 = scmp.lt.s32.totalorder %s1511_s20, 2 }
   0xf   : > { %s1996_s21 = smov (%p38_p0, %s36_s21), 0  ;;  %s198_s25 = sand.u32 1, %s1511_s20  }
  0x10   : > { %1964 = sst [smem:[#allocation17_spill]] %s1996_s21  ;;  %p1590_p3 = por %p74_p2, %p1946_p1 }
  0x11   : > { %s63_s24 = ssub.s32 %s1507_s19, %s1996_s21  ;;  %s1600_s26 = sand.u32 1, %s1499_s17  }
  0x12   : > { %p64_p5 = scmp.eq.s32.totalorder %s63_s24, 0  ;;  %s1045_s28 = sshll.u32 %s1600_s26, 8 }
  0x13   : > { %s1115_s29 = sshll.u32 %s1507_s19, 12  ;;  %s1967_s1 = sld [smem:[#allocation19_spill]] }
  0x14   : > { %s1603_s27 = scalar_select %p64_p5, %s1499_s17, %s66_s22  }
  0x15   : > { %s202_s7 = scalar_lea.vmem [#allocation5], %s1045_s28  ;;  %p1616_p7 = pnand %p1172_p6, %p1590_p3 }
  0x16   : > { %1966 = sst [smem:[#allocation18_spill]] %s1603_s27  ;;  %s210_s8 = sshll.u32 %s202_s7, 4  ;;  %s1612_s8 = int_to_ptr.vmem [resolvable:$true] %s210_s8 }
  0x17   : > { %s1968_s9 = scalar_select %p1616_p7, 1, 0 }
  0x18   : > { %s1620_s10 = scalar_lea.sflag [#allocation6], %s198_s25  ;;  %p1626_p9 = pneg %p1616_p7 }
  0x19   : > { %s1610_s6 = scalar_lea.hbm %s1967_s1, %s1115_s29  ;;  %s1308_s22 = scalar_lea.hbm %s1967_s1, 8192 }
  0x1a   : > { %s1303_s11 = scalar_lea.hbm %s1610_s6, 4096  ;;  %p1309_p12 = scmp.lt.u32.totalorder %s1610_s6, %s1967_s1 }
  0x1b   : > { %p1304_p8 = scmp.ne.s32.totalorder %s1610_s6, %s1303_s11  ;;  %p1310_p13 = scmp.lt.u32.totalorder %s1308_s22, %s1303_s11 }
  0x1c   : > { %s1969_s12 = scalar_select %p1626_p9, 1, 0 }
  0x1d   : > { %p1306_p10 = pnand %p1626_p9, %p1304_p8  ;;  %p1311_p0 = por %p1310_p13, %p1309_p12 }
  0x1e   : > { %p1312_p2 = scmp.lt.u32.totalorder %s1303_s11, %s1610_s6 }
  0x1f   : > { %p1307_p11 = pneg %p1306_p10 }
  0x20   : > { %p1313_p3 = por %p1312_p2, %p1311_p0 }
  0x22   : > { %p1314_p5 = pnand %p1313_p3, %p1307_p11 }
  0x24   : > { %1317 = shalt.err (!%p1314_p5)
}
  0x25   : > { %s1318_s25 = scalar_lea.vmem %s1612_s8, 4096  ;;  %s1513_s28 = smov [#allocation5]  }
  0x26   : > { %p1319_p6 = scmp.ne.s32.totalorder %s1612_s8, %s1318_s25  ;;  %s1323_s29 = sshll.u32 %s1513_s28, 4  ;;  %s1324_s29 = int_to_ptr.vmem [resolvable:$false] %s1323_s29 }
  0x27   : > { %s1325_s30 = scalar_lea.vmem %s1324_s29, 8192  ;;  %p1326_p4 = scmp.lt.s32.totalorder %s1612_s8, %s1324_s29 }
  0x28   : > { %p1321_p8 = pnand %p1319_p6, %p1626_p9  ;;  %p1327_p1 = scmp.lt.s32.totalorder %s1325_s30, %s1318_s25 }
  0x2a   : > { %p1322_p10 = pneg %p1321_p8  ;;  %p1328_p12 = por %p1327_p1, %p1326_p4 }
  0x2c   : > { %p1329_p13 = pnand %p1328_p12, %p1322_p10 }
  0x2e   : > { %1332 = shalt.err (!%p1329_p13)
}
  0x2f   : > { %s1947_s5 = smov 128   ;;  %s1948_s7 = smov 8  }
  0x30   : > { %1160 = dma.hbm_to_vmem [thread:$0]  (!%p1616_p7), %s1610_s6, 4096, %s1612_s8, %s1620_s10, %s1947_s5, %s1947_s5, %s1948_s7  }
  0x31   : > { %s1654_s11 = sadd.s32 4294967295, %s1511_s20   ;;  %s1041_s13 = sadd.s32 4294967294, %s1511_s20  }
  0x32   : > { %p79_p1 = scmp.ne.s32.totalorder %s1495_s16, %s1491_s15  ;;  %p1953_p4 = scmp.eq.s32.totalorder %s1654_s11, 0 }
  0x33   : > { %p159_p11 = scmp.eq.s32.totalorder %s1654_s11, 1  ;;  %p165_p0 = scmp.eq.s32.totalorder %s1041_s13, 1 }
  0x34   : > { %p1042_p2 = scmp.ge.s32.totalorder %s1511_s20, 1  ;;  %p1664_p3 = por %p1953_p4, %p79_p1 }
  0x35   : > { %p1971_p5 = scmp.ne.s32.totalorder %s1499_s17, %s1495_s16  ;;  %p1675_p8 = por %p165_p0, %p79_p1 }
  0x36   : > { %s1970_s14 = scalar_select %p1664_p3, 1, 0 }
  0x37   : > { %p1671_p6 = por %p159_p11, %p1971_p5  ;;  %p172_p10 = scmp.lt.s32.totalorder %s1511_s20, 3 }
  0x38   : > { %s1973_s8 = scalar_select %p1675_p8, 1, 0 }
  0x39   : > { %s1972_s6 = scalar_select %p1671_p6, 1, 0 }
  0x3a   : > { %p1680_p12 = pnand %p1042_p2, %p172_p10  ;;  %s1516_s23 = smov [#allocation2]  }
  0x3b   : > { %s184_s24 = sshll.u32 %s1516_s23, 4  ;;  %s1048_s25 = sshll.u32 %s1600_s26, 2  ;;  %s1684_s24 = int_to_ptr.vmem [resolvable:$true] %s184_s24 }
  0x3c   : > { %s1974_s22 = scalar_select %p1680_p12, 1, 0 }
  0x3d   : > { %p1153_p13 = pneg %p1680_p12  ;;  %s1116_s28 = sshll.u32 %s1507_s19, 6 }
  0x3e   : > { %s224_s29 = scalar_lea.vmem [#allocation7], %s1048_s25  ;;  %s1699_s1 = scalar_lea.hbm %s1943_s2, %s1116_s28 }
  0x3f   : > { %s233_s30 = sshll.u32 %s224_s29, 4  ;;  %p1692_p1 = pnand %p1153_p13, %p1953_p4  ;;  %s1701_s30 = int_to_ptr.vmem [resolvable:$true] %s233_s30 }
  0x40   : > { %s1051_s23 = sshll.u32 %s1600_s26, 7  ;;  %s1333_s17 = scalar_lea.hbm %s1941_s0, 256 }
  0x41   : > { %p1334_p11 = scmp.ne.s32.totalorder %s1941_s0, %s1333_s17  ;;  %p1335_p0 = pneg %p1692_p1 }
  0x42   : > { %p1340_p10 = scmp.lt.u32.totalorder %s1333_s17, %s1941_s0 }
  0x43   : > { %p1336_p2 = pnand %p1335_p0, %p1334_p11 }
  0x45   : > { %p1337_p5 = pneg %p1336_p2 }
  0x47   : > { %p1342_p13 = pnand %p1340_p10, %p1337_p5 }
  0x49   : > { %1345 = shalt.err (!%p1342_p13)
}
  0x4a   : > { %s1346_s7 = scalar_lea.vmem %s1684_s24, 256  ;;  %p1354_p3 = scmp.lt.s32.totalorder %s1684_s24, %s1684_s24 }
  0x4b   : > { %p1347_p4 = scmp.ne.s32.totalorder %s1684_s24, %s1346_s7  ;;  %p1355_p12 = scmp.lt.s32.totalorder %s1346_s7, %s1346_s7 }
  0x4d   : > { %p1349_p8 = pnand %p1347_p4, %p1335_p0  ;;  %p1356_p7 = por %p1355_p12, %p1354_p3 }
  0x4f   : > { %p1350_p6 = pneg %p1349_p8 }
  0x51   : > { %p1357_p9 = pnand %p1356_p7, %p1350_p6 }
  0x53   : > { %1360 = shalt.err (!%p1357_p9)
}
  0x54   : > { %s1976_s21 = smov 8   ;;  %s1977_s20 = smov 128  }
  0x55   : > { %1156 = dma.hbm_to_vmem [thread:$0]  (!%p1692_p1), %s1941_s0, 256, %s1684_s24, [#allocation3], %s1977_s20, %s1977_s20, %s1976_s21  }
  0x56   : > { %s1361_s28 = scalar_lea.hbm %s1699_s1, 64  ;;  %p1978_p3 = scmp.ne.s32.totalorder %s1969_s12, 0 }
  0x57   : > { %p1362_p4 = scmp.ne.s32.totalorder %s1699_s1, %s1361_s28  ;;  %s1366_s29 = scalar_lea.hbm %s1943_s2, 128 }
  0x58   : > { %p1367_p6 = scmp.lt.u32.totalorder %s1699_s1, %s1943_s2  ;;  %p1368_p8 = scmp.lt.u32.totalorder %s1366_s29, %s1361_s28 }
  0x59   : > { %p1364_p7 = pnand %p1362_p4, %p1978_p3  ;;  %p1370_p11 = scmp.lt.u32.totalorder %s1361_s28, %s1699_s1 }
  0x5a   : > { %p1369_p12 = por %p1368_p8, %p1367_p6 }
  0x5b   : > { %p1365_p9 = pneg %p1364_p7 }
  0x5c   : > { %p1371_p0 = por %p1370_p11, %p1369_p12 }
  0x5e   : > { %p1372_p2 = pnand %p1371_p0, %p1365_p9 }
  0x60   : > { %1375 = shalt.err (!%p1372_p2)
}
  0x61   : > { %s1376_s24 = scalar_lea.vmem %s1701_s30, 64  ;;  %s1517_s21 = smov [#allocation7]  }
  0x62   : > { %p1377_p1 = scmp.ne.s32.totalorder %s1701_s30, %s1376_s24  ;;  %s1381_s20 = sshll.u32 %s1517_s21, 4  ;;  %s1382_s20 = int_to_ptr.vmem [resolvable:$false] %s1381_s20 }
  0x63   : > { %s1383_s17 = scalar_lea.vmem %s1382_s20, 128  ;;  %p1384_p13 = scmp.lt.s32.totalorder %s1701_s30, %s1382_s20 }
  0x64   : > { %p1379_p5 = pnand %p1377_p1, %p1978_p3  ;;  %p1385_p4 = scmp.lt.s32.totalorder %s1383_s17, %s1376_s24 }
  0x66   : > { %p1380_p10 = pneg %p1379_p5  ;;  %p1386_p7 = por %p1385_p4, %p1384_p13 }
  0x68   : > { %p1387_p6 = pnand %p1386_p7, %p1380_p10 }
  0x6a   : > { %1390 = shalt.err (!%p1387_p6)
}
  0x6b   : > { %p1979_p9 = scmp.ne.s32.totalorder %s1968_s9, 0  ;;  %s1117_s27 = sshll.u32 %s1507_s19, 11 }
  0x6c   : > { %s1754_s13 = scalar_lea.hbm %s1944_s3, %s1117_s27  ;;  %s244_s29 = scalar_lea.vmem [#allocation8], %s1051_s23 }
  0x6d   : > { %1163 = dma.hbm_to_vmem [thread:$0]  (!%p1979_p9), %s1699_s1, 64, %s1701_s30, %s1620_s10  }
  0x6e   : > { %s252_s5 = sshll.u32 %s244_s29, 4  ;;  %s241_s7 = scalar_lea.sflag [#allocation9], %s1600_s26  ;;  %s1758_s5 = int_to_ptr.vmem [resolvable:$true] %s252_s5 }
  0x6f   : > { %s1391_s24 = scalar_lea.hbm %s1754_s13, 2048  ;;  %s1396_s30 = scalar_lea.hbm %s1944_s3, 4096 }
  0x70   : > { %p1392_p8 = scmp.ne.s32.totalorder %s1754_s13, %s1391_s24  ;;  %p1397_p0 = scmp.lt.u32.totalorder %s1754_s13, %s1944_s3 }
  0x71   : > { %p1398_p2 = scmp.lt.u32.totalorder %s1396_s30, %s1391_s24  ;;  %p1400_p5 = scmp.lt.u32.totalorder %s1391_s24, %s1754_s13 }
  0x72   : > { %p1394_p12 = pnand %p1392_p8, %p1978_p3 }
  0x73   : > { %p1399_p1 = por %p1398_p2, %p1397_p0 }
  0x74   : > { %p1395_p11 = pneg %p1394_p12 }
  0x75   : > { %p1401_p10 = por %p1400_p5, %p1399_p1 }
  0x77   : > { %p1402_p13 = pnand %p1401_p10, %p1395_p11 }
  0x79   : > { %1405 = shalt.err (!%p1402_p13)
}
  0x7a   : > { %s1406_s23 = scalar_lea.vmem %s1758_s5, 2048  ;;  %s1518_s17 = smov [#allocation8]  }
  0x7b   : > { %p1407_p4 = scmp.ne.s32.totalorder %s1758_s5, %s1406_s23  ;;  %s1411_s27 = sshll.u32 %s1518_s17, 4  ;;  %s1412_s27 = int_to_ptr.vmem [resolvable:$false] %s1411_s27 }
  0x7c   : > { %s1413_s28 = scalar_lea.vmem %s1412_s27, 4096  ;;  %p1414_p8 = scmp.lt.s32.totalorder %s1758_s5, %s1412_s27 }
  0x7d   : > { %p1409_p7 = pnand %p1407_p4, %p1978_p3  ;;  %p1415_p12 = scmp.lt.s32.totalorder %s1413_s28, %s1406_s23 }
  0x7f   : > { %p1410_p6 = pneg %p1409_p7  ;;  %p1416_p0 = por %p1415_p12, %p1414_p8 }
  0x81   : > { %p1417_p2 = pnand %p1416_p0, %p1410_p6 }
  0x83   : > { %1420 = shalt.err (!%p1417_p2)
}
  0x84   : > { %s1519_s25 = smov 64   ;;  %s1520_s29 = smov 4  }
  0x85   : > { %1166 = dma.hbm_to_vmem [thread:$0]  (!%p1979_p9), %s1754_s13, 2048, %s1758_s5, %s241_s7, %s1519_s25, %s1519_s25, %s1520_s29  }
  0x86   : > { %p1980_p3 = scmp.ne.s32.totalorder %s1974_s22, 0 }
  0x87   : > { %p1981_p11 = scmp.eq.s32.totalorder (!%p1980_p3), %s1654_s11, 0 }
  0x88   : > { %264 = sbr.rel (%p1980_p3) target bundleno = 729 (0x2d9), region = 36 }
  0x8f   : > { %1474 = dma.done.wait (%p1981_p11), [#allocation3], 256   ;;  %p1982_p1 = pmov %p1981_p11 }
  0x90   : > { %s270_s12 = sand.u32 1, %s1654_s11   ;;  %s1792_s24 = sand.u32 1, %s1495_s16  }
  0x91   : > { %1476 = vsyncadd (%p1982_p1), [#allocation3], 4294967040  ;;  %s1056_s1 = sshll.u32 %s1792_s24, 8  ;;  %s271_s9 = scalar_lea.sflag [#allocation6], %s270_s12 }
  0x92   : > { %s1795_s26 = scalar_lea.vmem [#allocation5], %s1056_s1  ;;  %p1983_p9 = scmp.ne.s32.totalorder %s1970_s14, 0 }
  0x94   : > { %1478 = dma.done.wait (%p1983_p9), %s271_s9, 4160  }
  0x95   : > { %1480 = vsyncadd (%p1983_p9), %s271_s9, 4294963136  ;;  %s1057_s22 = sshll.u32 %s1792_s24, 2  ;;  %s1058_s13 = sshll.u32 %s1792_s24, 7 }
  0x96   : > { %s1803_s5 = scalar_lea.vmem [#allocation7], %s1057_s22  ;;  %s289_s11 = scalar_lea.sflag [#allocation9], %s1792_s24 }
  0x97   : > { %s1806_s7 = scalar_lea.vmem [#allocation8], %s1058_s13 }
  0x98   : > { %1482 = dma.done.wait (%p1983_p9), %s289_s11, 2048  }
  0x99   : > { %1484 = vsyncadd (%p1983_p9), %s289_s11, 4294965248  ;;  %v1232_v0 = vld [vmem:[%s1795_s26 + $0x4] ss:$8 sps:$4 sm:$0xff]   ;;  %v1234_v1 = vld [vmem:[%s1795_s26] ss:$8 sps:$4 sm:$0xff]   ;;  %s1059_s14 = sshll.u32 %s1792_s24, 4 }
  0x9a   : > { %543 = vmatprep.subr.bf16.mxu0 %v1232_v0  ;;  %v1235_v2 = vld [vmem:[%s1795_s26 + $0x14] ss:$8 sps:$4 sm:$0xff]   ;;  %v1237_v3 = vld [vmem:[%s1795_s26 + $0x10] ss:$8 sps:$4 sm:$0xff]   ;;  %v1238_v4 = vld [vmem:[%s1795_s26 + $0x24] ss:$8 sps:$4 sm:$0xff]  }
  0x9b   : > { %544 = vmatpush1.bf16.msra.mxu0 %v1234_v1  ;;  %v1240_v5 = vld [vmem:[%s1795_s26 + $0x20] ss:$8 sps:$4 sm:$0xff]   ;;  %v1241_v6 = vld [vmem:[%s1795_s26 + $0x34] ss:$8 sps:$4 sm:$0xff]   ;;  %v1243_v7 = vld [vmem:[%s1795_s26 + $0x30] ss:$8 sps:$4 sm:$0xff]  }
  0x9c   : > { %545 = vmatprep.subr.bf16.mxu0 %v1235_v2  ;;  %v1244_v8 = vld [vmem:[%s1795_s26 + $0x44] ss:$8 sps:$4 sm:$0xff]   ;;  %v1246_v9 = vld [vmem:[%s1795_s26 + $0x40] ss:$8 sps:$4 sm:$0xff]   ;;  %v1247_v10 = vld [vmem:[%s1795_s26 + $0x54] ss:$8 sps:$4 sm:$0xff]  }
  0x9d   : > { %v1249_v11 = vld [vmem:[%s1795_s26 + $0x50] ss:$8 sps:$4 sm:$0xff]   ;;  %v1250_v12 = vld [vmem:[%s1795_s26 + $0x64] ss:$8 sps:$4 sm:$0xff]   ;;  %v1252_v13 = vld [vmem:[%s1795_s26 + $0x60] ss:$8 sps:$4 sm:$0xff]  }
  0x9e   : > { %v1253_v14 = vld [vmem:[%s1795_s26 + $0x74] ss:$8 sps:$4 sm:$0xff]   ;;  %v1255_v16 = vld [vmem:[%s1795_s26 + $0x70] ss:$8 sps:$4 sm:$0xff]   ;;  %v1256_v17 = vld [vmem:[%s1795_s26 + $0x84] ss:$8 sps:$4 sm:$0xff]  }
  0x9f   : > { %546 = vmatpush1.bf16.msra.mxu0 %v1237_v3  ;;  %v1282_v15 = vld [vmem:[#allocation2 + $0x4] ss:$8 sps:$4 sm:$0xff]   ;;  %v1258_v18 = vld [vmem:[%s1795_s26 + $0x80] ss:$8 sps:$4 sm:$0xff]   ;;  %v1261_v20 = vld [vmem:[%s1795_s26 + $0x90] ss:$8 sps:$4 sm:$0xff]  }
  0xa0   : > { %547 = vmatprep.subr.bf16.mxu0 %v1238_v4  ;;  %575 = vmatprep.mubr.bf16.mxu0 %v1282_v15  ;;  %v1259_v19 = vld [vmem:[%s1795_s26 + $0x94] ss:$8 sps:$4 sm:$0xff]   ;;  %v1262_v21 = vld [vmem:[%s1795_s26 + $0xa4] ss:$8 sps:$4 sm:$0xff]   ;;  %v1264_v22 = vld [vmem:[%s1795_s26 + $0xa0] ss:$8 sps:$4 sm:$0xff]  }
  0xa1   : > { %v1265_v23 = vld [vmem:[%s1795_s26 + $0xb4] ss:$8 sps:$4 sm:$0xff]   ;;  %v1267_v24 = vld [vmem:[%s1795_s26 + $0xb0] ss:$8 sps:$4 sm:$0xff]   ;;  %v1268_v25 = vld [vmem:[%s1795_s26 + $0xc4] ss:$8 sps:$4 sm:$0xff]  }
  0xa2   : > { %v1270_v26 = vld [vmem:[%s1795_s26 + $0xc0] ss:$8 sps:$4 sm:$0xff]   ;;  %v1271_v27 = vld [vmem:[%s1795_s26 + $0xd4] ss:$8 sps:$4 sm:$0xff]   ;;  %v1273_v28 = vld [vmem:[%s1795_s26 + $0xd0] ss:$8 sps:$4 sm:$0xff]  }
  0xa3   : > { %548 = vmatpush1.bf16.msra.mxu0 %v1240_v5  ;;  %v1274_v29 = vld [vmem:[%s1795_s26 + $0xe4] ss:$8 sps:$4 sm:$0xff]   ;;  %v1276_v30 = vld [vmem:[%s1795_s26 + $0xe0] ss:$8 sps:$4 sm:$0xff]   ;;  %v1277_v31 = vld [vmem:[%s1795_s26 + $0xf4] ss:$8 sps:$4 sm:$0xff]  }
  0xa4   : > { %549 = vmatprep.subr.bf16.mxu0 %v1241_v6  ;;  %v1279_v32 = vld [vmem:[%s1795_s26 + $0xf0] ss:$8 sps:$4 sm:$0xff]   ;;  %v1283_v34 = vld [vmem:[%s1806_s7 + $0x40] sm:$0xff]   ;;  %v1289_v40 = vld [vmem:[%s1806_s7 + $0x58] sm:$0xff]   ;;  %s1118_s10 = sshll.u32 %s1503_s18, 8  ;;  %s326_s30 = scalar_lea.vmem [#allocation10], %s1059_s14 }
  0xa5   : > { %v1280_v33 = vld [vmem:[#allocation2] ss:$8 sps:$4 sm:$0xff]   ;;  %v1284_v35 = vld [vmem:[%s1806_s7] sm:$0xff]   ;;  %1119 = vmatprep.subr.bf16.mxu1 %v1283_v34  ;;  %v1290_v41 = vld [vmem:[%s1806_s7 + $0x18] sm:$0xff]   ;;  %v1521_v34 = vmov 1983009808   ;;  %s1890_s17 = scalar_lea.hbm %s1945_s4, %s1118_s10 }
  0xa6   : > { %1120 = vmatpush3.bf16.msra.mxu1 %v1284_v35  ;;  %v1285_v36 = vld [vmem:[%s1806_s7 + $0x48] sm:$0xff]   ;;  %v1287_v38 = vld [vmem:[%s1806_s7 + $0x50] sm:$0xff]   ;;  %v1291_v42 = vld [vmem:[%s1806_s7 + $0x60] sm:$0xff]   ;;  %v637_v35 = vunpack.c.l.s4 %v1521_v34  ;;  %s901_s21 = sshll.u32 %s326_s30, 4  ;;  %s888_s27 = scalar_lea.sflag [#allocation4], %s1792_s24  ;;  %s1892_s21 = int_to_ptr.vmem [resolvable:$true] %s901_s21 }
  0xa7   : > { %550 = vmatpush1.bf16.msra.mxu0 %v1243_v7  ;;  %v1286_v37 = vld [vmem:[%s1806_s7 + $0x8] sm:$0xff]   ;;  %1121 = vmatprep.subr.bf16.mxu1 %v1285_v36  ;;  %v1288_v39 = vld [vmem:[%s1806_s7 + $0x10] sm:$0xff]   ;;  %v1292_v43 = vld [vmem:[%s1806_s7 + $0x20] sm:$0xff]   ;;  %v639_v36 = vlaneseq  ;;  %s1421_s28 = scalar_lea.vmem %s1892_s21, 256  ;;  %p1984_p10 = scmp.ne.s32.totalorder %s1972_s6, 0 }
  0xa8   : > { %551 = vmatprep.subr.bf16.mxu0 %v1244_v8  ;;  %v1293_v44 = vld [vmem:[%s1806_s7 + $0x68] sm:$0xff]   ;;  %v1295_v46 = vld [vmem:[%s1806_s7 + $0x70] sm:$0xff]   ;;  %v1297_v48 = vld [vmem:[%s1806_s7 + $0x78] sm:$0xff]   ;;  %p1422_p5 = scmp.ne.s32.totalorder %s1892_s21, %s1421_s28  ;;  %s1522_s18 = smov [#allocation10]  }
  0xa9   : > { %v1294_v45 = vld [vmem:[%s1806_s7 + $0x28] sm:$0xff]   ;;  %v1296_v47 = vld [vmem:[%s1806_s7 + $0x30] sm:$0xff]   ;;  %v1298_v49 = vld [vmem:[%s1806_s7 + $0x38] sm:$0xff]   ;;  %s1425_s25 = sshll.u32 %s1522_s18, 4  ;;  %s1426_s25 = int_to_ptr.vmem [resolvable:$false] %s1425_s25 }
  0xaa   : > { %1122 = vmatpush3.bf16.msra.mxu1 %v1286_v37  ;;  %v638_v37 = vunpack.c.0.s8 %v637_v35  ;;  %p1423_p13 = pnand %p1422_p5, %p1984_p10  ;;  %s1427_s29 = scalar_lea.vmem %s1426_s25, 512 }
  0xab   : > { %552 = vmatpush1.bf16.msra.mxu0 %v1246_v9  ;;  %1123 = vmatprep.subr.bf16.mxu1 %v1287_v38  ;;  %v640_v38 = vshrl.u32 %v639_v36, 7  ;;  %p1428_p7 = scmp.lt.s32.totalorder %s1892_s21, %s1426_s25  ;;  %p1429_p6 = scmp.lt.s32.totalorder %s1427_s29, %s1421_s28 }
  0xac   : > { %553 = vmatprep.subr.bf16.mxu0 %v1247_v10  ;;  %p1424_p4 = pneg %p1423_p13 }
  0xad   : > { %p1430_p8 = por %p1429_p6, %p1428_p7 }
  0xae   : > { %1124 = vmatpush3.bf16.msra.mxu1 %v1288_v39 }
  0xaf   : > { %554 = vmatpush1.bf16.msra.mxu0 %v1249_v11  ;;  %1125 = vmatprep.subr.bf16.mxu1 %v1289_v40  ;;  %v641_v40 = vsub.s32 %v638_v37, %v640_v38  ;;  %p1431_p12 = pnand %p1430_p8, %p1424_p4 }
  0xb0   : > { %555 = vmatprep.subr.bf16.mxu0 %v1250_v12 }
  0xb2   : > { %1126 = vmatpush3.bf16.msra.mxu1 %v1290_v41 }
  0xb3   : > { %556 = vmatpush1.bf16.msra.mxu0 %v1252_v13  ;;  %1127 = vmatprep.subr.bf16.mxu1 %v1291_v42 }
  0xb4   : > { %557 = vmatprep.subr.bf16.mxu0 %v1253_v14 }
  0xb6   : > { %1128 = vmatpush3.bf16.msra.mxu1 %v1292_v43  ;;  %v628_v43 = vld [vmem:[%s1803_s5] sm:$0xf] }
  0xb7   : > { %558 = vmatpush1.bf16.msra.mxu0 %v1255_v16  ;;  %1129 = vmatprep.subr.bf16.mxu1 %v1293_v44 }
  0xb8   : > { %559 = vmatprep.subr.bf16.mxu0 %v1256_v17 }
  0xba   : > { %1130 = vmatpush3.bf16.msra.mxu1 %v1294_v45  ;;  %v648_v45 = vsub.s32 0, %v640_v38 }
  0xbb   : > { %560 = vmatpush1.bf16.msra.mxu0 %v1258_v18  ;;  %1131 = vmatprep.subr.bf16.mxu1 %v1295_v46  ;;  %v652_v46 = vsub.s32 2, %v640_v38 }
  0xbc   : > { %561 = vmatprep.subr.bf16.mxu0 %v1259_v19 }
  0xbe   : > { %1132 = vmatpush3.bf16.msra.mxu1 %v1296_v47 }
  0xbf   : > { %562 = vmatpush1.bf16.msra.mxu0 %v1261_v20  ;;  %1133 = vmatprep.subr.bf16.mxu1 %v1297_v48 }
  0xc0   : > { %563 = vmatprep.subr.bf16.mxu0 %v1262_v21 }
  0xc2   : > { %1134 = vmatpush3.bf16.msra.mxu1 %v1298_v49 }
  0xc3   : > { %564 = vmatpush1.bf16.msra.mxu0 %v1264_v22 }
  0xc4   : > { %565 = vmatprep.subr.bf16.mxu0 %v1265_v23 }
  0xc7   : > { %566 = vmatpush1.bf16.msra.mxu0 %v1267_v24 }
  0xc8   : > { %567 = vmatprep.subr.bf16.mxu0 %v1268_v25 }
  0xcb   : > { %568 = vmatpush1.bf16.msra.mxu0 %v1270_v26 }
  0xcc   : > { %569 = vmatprep.subr.bf16.mxu0 %v1271_v27 }
  0xcf   : > { %570 = vmatpush1.bf16.msra.mxu0 %v1273_v28 }
  0xd0   : > { %571 = vmatprep.subr.bf16.mxu0 %v1274_v29 }
  0xd3   : > { %572 = vmatpush1.bf16.msra.mxu0 %v1276_v30 }
  0xd4   : > { %573 = vmatprep.subr.bf16.mxu0 %v1277_v31 }
  0xd7   : > { %574 = vmatpush1.bf16.msra.mxu0 %v1279_v32 }
  0xda   : > { %576 = vmatmul.mubr.bf16.vlgmr.msra.gmra.mrb[0].mxu0 %v1280_v33 }
 0x1ad   : > { %v1860_v50 = vpop.f32.mrb[0].mxu0 }
 0x1ae   : > { %v1862_v51 = vpop.f32.mrb[1].mxu0  ;;  %v602_v53 = vmul.f32 %v1860_v50, %v1860_v50 }
 0x1af   : > { %v1864_v52 = vpop.f32.mrb[2].mxu0  ;;  %v603_v57 = vmul.f32 %v1862_v51, %v1862_v51 }
 0x1b0   : > { %v586_v54 = vadd.f32 %v1864_v52, %v1860_v50  ;;  %v604_v55 = vmul.f32 %v1864_v52, %v1864_v52  ;;  %v1872_v56 = vpop.f32.mrb[3].mxu0 }
 0x1b1   : > { %v593_v58 = vadd.f32 %v1872_v56, %v1862_v51  ;;  %v605_v59 = vmul.f32 %v1872_v56, %v1872_v56 }
 0x1b2   : > { %v587_v60 = vrot.slane %v586_v54, 4  ;;  %v606_v61 = vadd.f32 %v604_v55, %v602_v53 }
 0x1b3   : > { %v594_v62 = vrot.slane %v593_v58, 4  ;;  %v613_v63 = vadd.f32 %v605_v59, %v603_v57 }
 0x1b4   : > { %v588_v0 = vadd.f32 %v587_v60, %v586_v54  ;;  %v607_v1 = vrot.slane %v606_v61, 4 }
 0x1b5   : > { %v595_v2 = vadd.f32 %v594_v62, %v593_v58  ;;  %v614_v3 = vrot.slane %v613_v63, 4 }
 0x1b6   : > { %v589_v4 = vrot.slane %v588_v0, 2  ;;  %v608_v5 = vadd.f32 %v607_v1, %v606_v61  ;;  %v686_v1 = vsub.s32 1, %v640_v38 }
 0x1b7   : > { %v596_v6 = vrot.slane %v595_v2, 2  ;;  %v615_v7 = vadd.f32 %v614_v3, %v613_v63 }
 0x1b8   : > { %v590_v8 = vadd.f32 %v589_v4, %v588_v0  ;;  %v609_v9 = vrot.slane %v608_v5, 2 }
 0x1b9   : > { %v597_v10 = vadd.f32 %v596_v6, %v595_v2  ;;  %v616_v11 = vrot.slane %v615_v7, 2  ;;  %v690_v2 = vsub.s32 3, %v640_v38 }
 0x1ba   : > { %v591_v12 = vrot.slane %v590_v8, 1  ;;  %v610_v13 = vadd.f32 %v609_v9, %v608_v5 }
 0x1bb   : > { %v598_v14 = vrot.slane %v597_v10, 1  ;;  %v617_v15 = vadd.f32 %v616_v11, %v615_v7 }
 0x1bc   : > { %v592_v16 = vadd.f32 %v591_v12, %v590_v8  ;;  %v611_v17 = vrot.slane %v610_v13, 1 }
 0x1bd   : > { %v599_v18 = vadd.f32 %v598_v14, %v597_v10  ;;  %v618_v19 = vrot.slane %v617_v15, 1 }
 0x1be   : > { %v600_v20 = vmul.f32 0.083333336, %v592_v16  ;;  %v612_v21 = vadd.f32 %v611_v17, %v610_v13 }
 0x1bf   : > { %v601_v22 = vmul.f32 0.083333336, %v599_v18  ;;  %v619_v23 = vadd.f32 %v618_v19, %v617_v15 }
 0x1c0   : > { %v620_v24 = vmul.f32 0.083333336, %v612_v21  ;;  %v622_v25 = vmul.f32 %v600_v20, %v600_v20 }
 0x1c1   : > { %v621_v26 = vmul.f32 0.083333336, %v619_v23  ;;  %v623_v27 = vmul.f32 %v601_v22, %v601_v22 }
 0x1c2   : > { %v624_v28 = vsub.f32 %v620_v24, %v622_v25 }
 0x1c3   : > { %v625_v29 = vsub.f32 %v621_v26, %v623_v27 }
 0x1c4   : > { %v626_v30 = vmax.f32 %v624_v28, 0.0 }
 0x1c5   : > { %v627_v31 = vmax.f32 %v625_v29, 0.0 }
 0x1c6   : > { %v629_v32 = vadd.f32 1e-05, %v626_v30 }
 0x1c7   : > { %v630_v33 = vadd.f32 1e-05, %v627_v31 }
 0x1c8   : > { %1299 = vrsqrt.f32 %v629_v32 }
 0x1c9   : > { %1301 = vrsqrt.f32 %v630_v33 }
 0x1d2   : > { %v1300_v39 = vpop.eup %1299 }
 0x1d3   : > { %v1302_v41 = vpop.eup %1301 }
 0x1d4   : > { %v635_v42 = vcombine.low %v1300_v39, %v1302_v41 }
 0x1d6   : > { %v642_v44 = vrot.slane %v635_v42, %v641_v40 }
 0x1d8   : > { %v644_v47 = vmul.f32 %v642_v44, %v628_v43 }
 0x1da   : > { %v649_v48 = vrot.slane %v644_v47, %v648_v45  ;;  %v653_v49 = vrot.slane %v644_v47, %v652_v46 }
 0x1dc   : > { %v656_v53 = vmul.f32 %v649_v48, %v600_v20  ;;  %v657_v54 = vmul.f32 %v653_v49, %v601_v22  ;;  %v678_v55 = vrot.slane %v653_v49, %v648_v45  ;;  %v674_v57 = vrot.slane %v649_v48, %v648_v45 }
 0x1de   : > { %v660_v58 = vcombine.low %v656_v53, %v657_v54  ;;  %v682_v59 = vmul.f32 %v678_v55, %v1872_v56  ;;  %v680_v60 = vmul.f32 %v678_v55, %v1862_v51  ;;  %v679_v61 = vmul.f32 %v674_v57, %v1860_v50 }
 0x1df   : > { %v681_v62 = vmul.f32 %v674_v57, %v1864_v52 }
 0x1e0   : > { %v667_v63 = vrot.slane %v660_v58, %v641_v40 }
 0x1e2   : > { %v668_v0 = vrot.slane %v667_v63, 7 }
 0x1e4   : > { %v670_v3 = vsub.f32 %v628_v43, %v668_v0 }
 0x1e6   : > { %v691_v4 = vrot.slane %v670_v3, %v690_v2  ;;  %v687_v5 = vrot.slane %v670_v3, %v686_v1 }
 0x1e8   : > { %v701_v6 = vrot.slane %v691_v4, %v686_v1  ;;  %v697_v7 = vrot.slane %v687_v5, %v686_v1 }
 0x1ea   : > { %v703_v8 = vadd.f32 %v701_v6, %v680_v60  ;;  %v705_v9 = vadd.f32 %v701_v6, %v682_v59  ;;  %v702_v56 = vadd.f32 %v697_v7, %v679_v61  ;;  %v704_v10 = vadd.f32 %v697_v7, %v681_v62 }
 0x1ec   : > { %v707_v51 = vmax.f32 %v703_v8, 0.0  ;;  %v709_v11 = vmax.f32 %v705_v9, 0.0  ;;  %v706_v50 = vmax.f32 %v702_v56, 0.0  ;;  %v708_v12 = vmax.f32 %v704_v10, 0.0 }
 0x1ee   : > { %v713_v52 = vpack.c.bf16 %v709_v11, %v707_v51  ;;  %v712_v13 = vpack.c.bf16 %v708_v12, %v706_v50 }
 0x1f0   : > { %874 = vmatprep.mubr.bf16.mxu1 %v713_v52 }
 0x1f1   : > { %875 = vmatmul.mubr.bf16.vlgmr.msra.gmra.mrb[0].mxu1 %v712_v13 }
 0x2c4   : > { %v1135_v14 = vpop.f32.mrb[0].mxu1 }
 0x2c5   : > { %v1136_v15 = vpop.f32.mrb[1].mxu1 }
 0x2c6   : > { %v1137_v16 = vadd.f32 %v1136_v15, %v1135_v14  ;;  %v1138_v17 = vpop.f32.mrb[2].mxu1 }
 0x2c7   : > { %v1139_v18 = vpop.f32.mrb[3].mxu1 }
 0x2c8   : > { %v1140_v19 = vadd.f32 %v1139_v18, %v1138_v17  ;;  %885 = vst [vmem:[%s326_s30] sm:$0xff] %v1137_v16 }
 0x2ca   : > { %886 = vst [vmem:[%s326_s30 + $0x8] sm:$0xff] %v1140_v19 }
 0x2cb   : > { %1434 = shalt.err (!%p1431_p12)
}
 0x2cc   : > { %s1435_s12 = scalar_lea.hbm %s1890_s17, 256  ;;  %s1439_s26 = scalar_lea.hbm %s1945_s4, 512 }
 0x2cd   : > { %p1436_p0 = scmp.ne.s32.totalorder %s1890_s17, %s1435_s12  ;;  %p1440_p11 = scmp.lt.u32.totalorder %s1890_s17, %s1945_s4 }
 0x2ce   : > { %p1441_p1 = scmp.lt.u32.totalorder %s1439_s26, %s1435_s12  ;;  %p1443_p5 = scmp.lt.u32.totalorder %s1435_s12, %s1890_s17 }
 0x2cf   : > { %p1437_p2 = pnand %p1436_p0, %p1984_p10 }
 0x2d0   : > { %p1442_p9 = por %p1441_p1, %p1440_p11 }
 0x2d1   : > { %p1438_p3 = pneg %p1437_p2 }
 0x2d2   : > { %p1444_p13 = por %p1443_p5, %p1442_p9 }
 0x2d4   : > { %p1445_p4 = pnand %p1444_p13, %p1438_p3 }
 0x2d6   : > { %1448 = shalt.err (!%p1445_p4)
}
 0x2d7   : > { %s1523_s5 = smov 128   ;;  %s1524_s11 = smov 8  }
 0x2d8   : > { %1151 = dma.vmem_to_hbm [thread:$0]  (%p1984_p10), %s1892_s21, 256, %s1890_s17, %s888_s27, %s1523_s5, %s1523_s5, %s1524_s11  }
 0x2d9 PF: > { %s1985_s7 = sld [smem:[#allocation16_spill]]  ;;  %s916_s14 = sand.u32 1, %s1491_s15  }
 0x2da   : > { %p1986_p7 = scmp.ne.s32.totalorder %s1973_s8, 0  ;;  %s917_s10 = scalar_lea.sflag [#allocation4], %s916_s14 }
 0x2df   : > { %p1987_p6 = scmp.ge.s32.totalorder %s1985_s7, 2 }
 0x2e1   : > { %p1168_p8 = pnand %p1987_p6, %p1986_p7 }
 0x2e3   : > { %1486 = dma.done.wait (!%p1168_p8), %s917_s10, 256  }
 0x2e4   : > { %1488 = vsyncadd (!%p1168_p8), %s917_s10, 4294967040  ;;  %s24_s20 = sadd.s32 1, %s1985_s7   ;;  %s1988_s30 = sld [smem:[#allocation15_spill]] }
 0x2e5   : > { %p21_p12 = scmp.ge.s32.totalorder %s24_s20, 4   ;;  %s1989_s17 = sld [smem:[#allocation18_spill]] }
 0x2e6   : > { %s1990_s6 = sld [smem:[#allocation17_spill]]  ;;  %s1991_s15 = smov %s1495_s16 }
 0x2e7   : > { %s1993_s18 = smov %s1507_s19  ;;  %23 = sbr.rel (!%p21_p12) target bundleno = 11 (0xb), region = 114 }
 0x2ea   : > { %s1992_s16 = smov %s1988_s30 }
 0x2ec   : > { %s1994_s19 = smov %s1990_s6 }
 0x2ee   :  { %922 = vsyncpa [#allocation3], 1 }
 0x2ef   :  { %924 = vsyncpa [#allocation3 + $0x1], 1 }
 0x2f0   :  { %925 = vsyncpa [#allocation6], 1 }
 0x2f1   :  { %927 = vsyncpa [#allocation6 + $0x1], 1 }
 0x2f2   :  { %928 = vsyncpa [#allocation9], 1 }
 0x2f3   :  { %930 = vsyncpa [#allocation9 + $0x1], 1 }
 0x2f4   :  { %931 = vsyncpa [#allocation4], 1 }
 0x2f5   :  { %933 = vsyncpa [#allocation4 + $0x1], 1 }

</bundles_post_ra>
